<compile_context>
chip_gen: v7x
topology: tpu7x:2x2x1
jax: 0.10.0
libtpu: 0.0.40
codegen_flags: <defaults>
</compile_context>

<pallas_src>
import jax
import jax.numpy as jnp
from jax.experimental import pallas as pl
from jax.experimental.pallas import tpu as pltpu

# Transposed-conv tap table for stride 2, k=4, pad=1.
# _TAPS[parity] = ((kernel_tap_a, input_offset_a), (kernel_tap_b, input_offset_b))
# output index o = 2*q + parity sums x[q + d] * W[..., k] over the listed (k, d).
_TAPS = (((1, 0), (3, -1)), ((0, 1), (2, 0)))
_EPS = 1e-5
_TM_CAP = 2048      # max spatial tile (lanes) per grid step
_SSQ_CHUNK = 512    # lane chunk for the sum-of-squares reduction


def _vmem_limit_bytes():
    """Generation-aware VMEM limit: ~3/4 of physical VMEM, capped at 100 MiB."""
    cap = None
    get_info = getattr(pltpu, "get_tpu_info", None)
    if get_info is not None:
        try:
            cap = int(get_info().vmem_capacity_bytes)
        except Exception:
            cap = None
    if cap is None:
        cap = 64 * 1024 * 1024      # conservative fallback (safe on every gen)
    return int(min((cap * 3) // 4, 100 * 1024 * 1024))


_VMEM_LIMIT = _vmem_limit_bytes()


def _pick_tile(m):
    """Largest multiple-of-128 divisor of m that is <= _TM_CAP (else m itself)."""
    if m <= _TM_CAP:
        return m
    for t in range(_TM_CAP, 127, -128):
        if m % t == 0:
            return t
    return m


def _deconv_stats_kernel(xcol_ref, w_ref, y_ref, ssum_ref, ssq_ref):
    # xcol_ref : (1, 9*Cin, TM) bf16  im2col'd ReLU(x) spatial tile
    # w_ref    : (Rc, 9*Cin)    bf16  Rc = 4*Cout, row = c*4 + ph*2 + pw
    # y_ref    : (1, Rc, TM)    bf16  pre-BN transposed-conv output tile
    # ssum_ref : (1, Rc, 1)     f32   per-row sum,        accumulated over TM tiles
    # ssq_ref  : (1, Rc, 1)     f32   per-row sum-of-sq., accumulated over TM tiles
    rc = w_ref.shape[0]
    tm = xcol_ref.shape[-1]

    # One MXU matmul covers all 4 taps of all 4 output parities (weight rows are
    # zero for the taps a parity does not use).  Spatial (TM) is the lane dim.
    acc = jnp.dot(w_ref[...], xcol_ref[0],
                  preferred_element_type=jnp.float32)          # (Rc, TM) f32

    # Lane-dense bf16 store of the compact (unpadded) intermediate.
    y_ref[0] = acc.astype(jnp.bfloat16)

    # BatchNorm partial stats from the live f32 accumulator.  Reduce in lane
    # chunks so the squared temporary stays a handful of vregs.
    ssum = jnp.zeros((rc, 1), jnp.float32)
    ssq = jnp.zeros((rc, 1), jnp.float32)
    step = min(tm, _SSQ_CHUNK)
    for c0 in range(0, tm, step):
        chunk = acc[:, c0:c0 + step]
        ssum = ssum + jnp.sum(chunk, axis=1, keepdims=True)
        ssq = ssq + jnp.sum(chunk * chunk, axis=1, keepdims=True)

    @pl.when(pl.program_id(1) == 0)
    def _():
        ssum_ref[...] = jnp.zeros_like(ssum_ref)
        ssq_ref[...] = jnp.zeros_like(ssq_ref)

    ssum_ref[0] += ssum
    ssq_ref[0] += ssq
    # TODO(synk): dropout path (module flag dropout=True) not implemented; the
    # default config uses dropout=False.


@jax.jit
def dblock_forward(x_nchw, w_pt, bias, gamma, beta):
    """DBlock.forward with default flags.  x_nchw: (N,Cin,H,W) -> (N,Cout,2H,2W)."""
    # ConvTranspose bias is exactly cancelled by the training-mode BatchNorm
    # that immediately follows.
    # TODO(synk): batch_norm=False / eval-mode BN would need the bias added back;
    # that configuration is not implemented here.
    del bias
    N, Cin, H, W = x_nchw.shape
    Cout = w_pt.shape[1]
    Rc = 4 * Cout
    K9 = 9 * Cin
    M = H * W
    TM = _pick_tile(M)

    # --- glue: ReLU + zero spatial pad + im2col (9 shifted slabs) + bf16 -------
    # Done on the tiny NCHW input (no layout transpose needed) so the kernel sees
    # a plain matmul operand and does zero in-kernel relayout work.
    xr = jnp.maximum(x_nchw.astype(jnp.float32), 0.0)
    xp = jnp.pad(xr, ((0, 0), (0, 0), (1, 1), (1, 1)))
    slabs = [xp[:, :, 1 + dh:1 + dh + H, 1 + dw:1 + dw + W]
             for dh in (-1, 0, 1) for dw in (-1, 0, 1)]
    xcol = jnp.stack(slabs, axis=1).reshape(N, K9, M).astype(jnp.bfloat16)

    # --- weights: (Rc, K9); row = c*4 + ph*2 + pw, col = ((dh+1)*3+(dw+1))*Cin+ci
    wf = jnp.zeros((Cout, 2, 2, 3, 3, Cin), jnp.float32)
    for ph in range(2):
        for pw in range(2):
            for kh, dh in _TAPS[ph]:
                for kw, dw in _TAPS[pw]:
                    wf = wf.at[:, ph, pw, dh + 1, dw + 1, :].set(
                        jnp.transpose(w_pt[:, :, kh, kw]))       # (Cout, Cin)
    wmat = wf.reshape(Rc, K9).astype(jnp.bfloat16)

    # --- single Pallas pass: fused ReLU'd transposed conv + BN partial stats ---
    y, s_sum, s_sq = pl.pallas_call(
        _deconv_stats_kernel,
        grid=(N, M // TM),
        in_specs=[
            pl.BlockSpec((1, K9, TM), lambda n, m: (n, 0, m)),
            pl.BlockSpec((Rc, K9), lambda n, m: (0, 0)),
        ],
        out_specs=(
            pl.BlockSpec((1, Rc, TM), lambda n, m: (n, 0, m)),
            pl.BlockSpec((1, Rc, 1), lambda n, m: (n, 0, 0)),
            pl.BlockSpec((1, Rc, 1), lambda n, m: (n, 0, 0)),
        ),
        out_shape=(
            jax.ShapeDtypeStruct((N, Rc, M), jnp.bfloat16),
            jax.ShapeDtypeStruct((N, Rc, 1), jnp.float32),
            jax.ShapeDtypeStruct((N, Rc, 1), jnp.float32),
        ),
        compiler_params=pltpu.CompilerParams(
            dimension_semantics=("parallel", "arbitrary"),
            vmem_limit_bytes=_VMEM_LIMIT),
    )(xcol, wmat)

    # --- combine tiny stats -> per-channel scale/shift (glue) ------------------
    count = float(N * 4 * H * W)
    sum_c = jnp.sum(s_sum[..., 0], axis=0).reshape(Cout, 4).sum(axis=1)
    sq_c = jnp.sum(s_sq[..., 0], axis=0).reshape(Cout, 4).sum(axis=1)
    mean = sum_c / count
    var = sq_c / count - mean * mean          # biased, training-mode variance (f32)
    inv = jax.lax.rsqrt(var + _EPS)
    scale = gamma.astype(jnp.float32) * inv
    shift = beta.astype(jnp.float32) - mean * scale

    # --- glue: BN apply fused into the one unavoidable interleave/NCHW transpose
    y6 = y.reshape(N, Cout, 2, 2, H, W).astype(jnp.float32)
    y6 = y6 * scale[None, :, None, None, None, None] \
        + shift[None, :, None, None, None, None]
    out = jnp.transpose(y6, (0, 1, 4, 2, 5, 3))          # (N, Cout, H, 2, W, 2)
    return out.reshape(N, Cout, 2 * H, 2 * W)


def dblock_reference(x_nchw, w_pt, bias, gamma, beta):
    """Pure-JAX f32 reference matching PyTorch semantics (batch_norm=True, no dropout)."""
    xr = jnp.maximum(x_nchw, 0.0)
    x_nhwc = jnp.transpose(xr, (0, 2, 3, 1))
    # ConvTranspose2d(k=4, s=2, p=1) == lhs-dilated conv with flipped kernel.
    w_flip = jnp.transpose(w_pt, (2, 3, 0, 1))[::-1, ::-1, :, :]   # HWIO flipped
    y = jax.lax.conv_general_dilated(
        x_nhwc, w_flip, window_strides=(1, 1),
        padding=[(2, 2), (2, 2)], lhs_dilation=(2, 2),
        dimension_numbers=("NHWC", "HWIO", "NHWC"))
    y = y + bias.reshape(1, 1, 1, -1)
    mean = jnp.mean(y, axis=(0, 1, 2), keepdims=True)
    var = jnp.mean((y - mean) ** 2, axis=(0, 1, 2), keepdims=True)
    y = (y - mean) * jax.lax.rsqrt(var + _EPS) * gamma.reshape(1, 1, 1, -1) \
        + beta.reshape(1, 1, 1, -1)
    return jnp.transpose(y, (0, 3, 1, 2))


if __name__ == "__main__":
    N, Cin, Cout, H, W, K = 2, 4, 8, 16, 16, 4

    key = jax.random.PRNGKey(0)
    k1, k2, k3, k4, k5 = jax.random.split(key, 5)
    w_pt = 0.1 * jax.random.normal(k1, (Cin, Cout, K, K), jnp.float32)   # ConvTranspose2d.weight
    bias = 0.1 * jax.random.normal(k2, (Cout,), jnp.float32)             # ConvTranspose2d.bias
    gamma = 1.0 + 0.1 * jax.random.normal(k3, (Cout,), jnp.float32)      # BatchNorm2d.weight
    beta = 0.1 * jax.random.normal(k4, (Cout,), jnp.float32)             # BatchNorm2d.bias
    x = jax.random.normal(k5, (N, Cin, H, W), jnp.float32)

    out = jax.block_until_ready(dblock_forward(x, w_pt, bias, gamma, beta))
    ref = jax.block_until_ready(dblock_reference(x, w_pt, bias, gamma, beta))

    assert out.shape == (N, Cout, 2 * H, 2 * W), out.shape
    # bf16 MXU operands + bf16 intermediate -> loosened tolerance vs f32 reference.
    assert jnp.allclose(out, ref, atol=3e-2, rtol=3e-2), \
        float(jnp.max(jnp.abs(out - ref)))

    print("KERNEL_OK")
</pallas_src>

<mosaic_0001>
module attributes {stable_mosaic.version = 11 : i64} {
  func.func @_deconv_stats_kernel(%arg0: i32, %arg1: i32, %arg2: memref<1x36x256xbf16, #tpu.memory_space<vmem>>, %arg3: memref<32x36xbf16, #tpu.memory_space<vmem>>, %arg4: memref<1x32x256xbf16, #tpu.memory_space<vmem>>, %arg5: memref<1x32x1xf32, #tpu.memory_space<vmem>>, %arg6: memref<1x32x1xf32, #tpu.memory_space<vmem>>) attributes {dimension_semantics = [#tpu.dimension_semantics<parallel>, #tpu.dimension_semantics<arbitrary>], iteration_bounds = array<i64: 2, 1>, scalar_prefetch = 0 : i64, scratch_operands = 0 : i64, tpu.core_type = #tpu.core_type<tc>, window_params = [{transform_indices = @transform_0, window_bounds = array<i64: 1, 36, 256>}, {pipeline_mode = #tpu.pipeline_mode<synchronous>, transform_indices = @transform_1, window_bounds = array<i64: 32, 36>}, {transform_indices = @transform_2, window_bounds = array<i64: 1, 32, 256>}, {transform_indices = @transform_3, window_bounds = array<i64: 1, 32, 1>}, {transform_indices = @transform_4, window_bounds = array<i64: 1, 32, 1>}]} {
    %c0 = arith.constant 0 : index
    %c0_0 = arith.constant 0 : index
    %0 = vector.load %arg3[%c0, %c0_0] : memref<32x36xbf16, #tpu.memory_space<vmem>>, vector<32x36xbf16>
    %c0_1 = arith.constant 0 : index
    %c0_2 = arith.constant 0 : index
    %c0_3 = arith.constant 0 : index
    %1 = vector.load %arg2[%c0_1, %c0_2, %c0_3] : memref<1x36x256xbf16, #tpu.memory_space<vmem>>, vector<1x36x256xbf16>
    %2 = vector.shape_cast %1 : vector<1x36x256xbf16> to vector<36x256xbf16>
    %cst = arith.constant dense<0.000000e+00> : vector<32x256xf32>
    %3 = tpu.matmul %0, %2, %cst {dimension_numbers = #tpu.dot_dimension_numbers<[1], [0], [0], [1], [0, 0, 1, 1], [], []>} : vector<32x36xbf16>, vector<36x256xbf16>, vector<32x256xf32> -> vector<32x256xf32>
    %4 = arith.truncf %3 : vector<32x256xf32> to vector<32x256xbf16>
    %c0_4 = arith.constant 0 : index
    %c0_5 = arith.constant 0 : index
    %c0_6 = arith.constant 0 : index
    %5 = vector.load %arg4[%c0_4, %c0_5, %c0_6] : memref<1x32x256xbf16, #tpu.memory_space<vmem>>, vector<1x32x256xbf16>
    %6 = vector.shape_cast %5 : vector<1x32x256xbf16> to vector<32x256xbf16>
    %7 = vector.shape_cast %4 : vector<32x256xbf16> to vector<1x32x256xbf16>
    tpu.vector_store %arg4[%c0_4, %c0_5, %c0_6], %7 {strides = array<i32>} : memref<1x32x256xbf16, #tpu.memory_space<vmem>>, vector<1x32x256xbf16>,
    %cst_7 = arith.constant 0.000000e+00 : f32
    %8 = vector.broadcast %cst_7 : f32 to vector<32x1xf32>
    %cst_8 = arith.constant 0.000000e+00 : f32
    %9 = vector.broadcast %cst_8 : f32 to vector<32x1xf32>
    %cst_9 = arith.constant dense<0.000000e+00> : vector<32xf32>
    %10 = vector.multi_reduction <add>, %3, %cst_9 [1] : vector<32x256xf32> to vector<32xf32>
    %11 = vector.shape_cast %10 : vector<32xf32> to vector<32x1xf32>
    %12 = arith.addf %8, %11 : vector<32x1xf32>
    %13 = arith.mulf %3, %3 : vector<32x256xf32>
    %cst_10 = arith.constant dense<0.000000e+00> : vector<32xf32>
    %14 = vector.multi_reduction <add>, %13, %cst_10 [1] : vector<32x256xf32> to vector<32xf32>
    %15 = vector.shape_cast %14 : vector<32xf32> to vector<32x1xf32>
    %16 = arith.addf %9, %15 : vector<32x1xf32>
    %c0_i32 = arith.constant 0 : i32
    %17 = arith.cmpi eq, %arg1, %c0_i32 : i32
    %18 = arith.extui %17 : i1 to i32
    %c0_i32_11 = arith.constant 0 : i32
    %19 = arith.cmpi ne, %18, %c0_i32_11 : i32
    scf.if %19 {
      %cst_24 = arith.constant 0.000000e+00 : f32
      %32 = vector.broadcast %cst_24 : f32 to vector<1x32x1xf32>
      %c0_25 = arith.constant 0 : index
      %c0_26 = arith.constant 0 : index
      %c0_27 = arith.constant 0 : index
      %33 = vector.load %arg5[%c0_25, %c0_26, %c0_27] : memref<1x32x1xf32, #tpu.memory_space<vmem>>, vector<1x32x1xf32>
      tpu.vector_store %arg5[%c0_25, %c0_26, %c0_27], %32 {strides = array<i32>} : memref<1x32x1xf32, #tpu.memory_space<vmem>>, vector<1x32x1xf32>,
      %cst_28 = arith.constant 0.000000e+00 : f32
      %34 = vector.broadcast %cst_28 : f32 to vector<1x32x1xf32>
      %c0_29 = arith.constant 0 : index
      %c0_30 = arith.constant 0 : index
      %c0_31 = arith.constant 0 : index
      %35 = vector.load %arg6[%c0_29, %c0_30, %c0_31] : memref<1x32x1xf32, #tpu.memory_space<vmem>>, vector<1x32x1xf32>
      tpu.vector_store %arg6[%c0_29, %c0_30, %c0_31], %34 {strides = array<i32>} : memref<1x32x1xf32, #tpu.memory_space<vmem>>, vector<1x32x1xf32>,
    } else {
    }
    %c0_12 = arith.constant 0 : index
    %c0_13 = arith.constant 0 : index
    %c0_14 = arith.constant 0 : index
    %20 = vector.load %arg5[%c0_12, %c0_13, %c0_14] : memref<1x32x1xf32, #tpu.memory_space<vmem>>, vector<1x32x1xf32>
    %21 = vector.shape_cast %20 : vector<1x32x1xf32> to vector<32x1xf32>
    %22 = arith.addf %21, %12 : vector<32x1xf32>
    %c0_15 = arith.constant 0 : index
    %c0_16 = arith.constant 0 : index
    %c0_17 = arith.constant 0 : index
    %23 = vector.load %arg5[%c0_15, %c0_16, %c0_17] : memref<1x32x1xf32, #tpu.memory_space<vmem>>, vector<1x32x1xf32>
    %24 = vector.shape_cast %23 : vector<1x32x1xf32> to vector<32x1xf32>
    %25 = vector.shape_cast %22 : vector<32x1xf32> to vector<1x32x1xf32>
    tpu.vector_store %arg5[%c0_15, %c0_16, %c0_17], %25 {strides = array<i32>} : memref<1x32x1xf32, #tpu.memory_space<vmem>>, vector<1x32x1xf32>,
    %c0_18 = arith.constant 0 : index
    %c0_19 = arith.constant 0 : index
    %c0_20 = arith.constant 0 : index
    %26 = vector.load %arg6[%c0_18, %c0_19, %c0_20] : memref<1x32x1xf32, #tpu.memory_space<vmem>>, vector<1x32x1xf32>
    %27 = vector.shape_cast %26 : vector<1x32x1xf32> to vector<32x1xf32>
    %28 = arith.addf %27, %16 : vector<32x1xf32>
    %c0_21 = arith.constant 0 : index
    %c0_22 = arith.constant 0 : index
    %c0_23 = arith.constant 0 : index
    %29 = vector.load %arg6[%c0_21, %c0_22, %c0_23] : memref<1x32x1xf32, #tpu.memory_space<vmem>>, vector<1x32x1xf32>
    %30 = vector.shape_cast %29 : vector<1x32x1xf32> to vector<32x1xf32>
    %31 = vector.shape_cast %28 : vector<32x1xf32> to vector<1x32x1xf32>
    tpu.vector_store %arg6[%c0_21, %c0_22, %c0_23], %31 {strides = array<i32>} : memref<1x32x1xf32, #tpu.memory_space<vmem>>, vector<1x32x1xf32>,
    return
  }
  func.func @transform_0(%arg0: i32, %arg1: i32) -> (i32, i32, i32) {
    %c0_i32 = arith.constant 0 : i32
    %c0_i32_0 = arith.constant 0 : i32
    return %arg0, %c0_i32, %arg1 : i32, i32, i32
  }
  func.func @transform_1(%arg0: i32, %arg1: i32) -> (i32, i32) {
    %c0_i32 = arith.constant 0 : i32
    %c0_i32_0 = arith.constant 0 : i32
    %c0_i32_1 = arith.constant 0 : i32
    return %c0_i32, %c0_i32_0 : i32, i32
  }
  func.func @transform_2(%arg0: i32, %arg1: i32) -> (i32, i32, i32) {
    %c0_i32 = arith.constant 0 : i32
    %c0_i32_0 = arith.constant 0 : i32
    return %arg0, %c0_i32, %arg1 : i32, i32, i32
  }
  func.func @transform_3(%arg0: i32, %arg1: i32) -> (i32, i32, i32) {
    %c0_i32 = arith.constant 0 : i32
    %c0_i32_0 = arith.constant 0 : i32
    %c0_i32_1 = arith.constant 0 : i32
    return %arg0, %c0_i32, %c0_i32_0 : i32, i32, i32
  }
  func.func @transform_4(%arg0: i32, %arg1: i32) -> (i32, i32, i32) {
    %c0_i32 = arith.constant 0 : i32
    %c0_i32_0 = arith.constant 0 : i32
    %c0_i32_1 = arith.constant 0 : i32
    return %arg0, %c0_i32, %c0_i32_0 : i32, i32, i32
  }
}

</mosaic_0001>

<bundles_post_ra>
// kernel: dblock_forward.1
= control target key start
LH: loop header
LB: loop body
LE: loop exit
PB: predicated region body
PF: predicated region fallthrough
CT: control target
= control target key end

     0   :  { %s763_s15 = smov 0   ;;  %s765_s16 = smov 0   ;;  %s852_s0 = inlined_call_operand.vmem [shape: bf16[2,36,256], index: 0, kind: input, shape index: {}]   ;;  %s853_s1 = inlined_call_operand.vmem [shape: bf16[32,36], index: 1, kind: input, shape index: {}]   ;;  %s854_s2 = inlined_call_operand.vmem [shape: bf16[2,32,256], index: 2, kind: output, shape index: {0}]   ;;  %s855_s3 = inlined_call_operand.vmem [shape: f32[2,32,1], index: 3, kind: output, shape index: {1}]   ;;  %s856_s4 = inlined_call_operand.vmem [shape: f32[2,32,1], index: 4, kind: output, shape index: {2}]  }
   0x1   :  { %s767_s17 = smov 0  }
   0x2 LB: > { %s27_s18 = sadd.s32 1, %s730_s16  ;;  %p637_p0 = scmp.ge.s32.totalorder %s734_s17, 1  ;;  %s734_s17 = sphi %s767_s17, %s15_s17   ;;  %s730_s16 = sphi %s765_s16, %s858_s16   ;;  %s726_s15 = sphi %s763_s15, %s857_s15  }
   0x3   : > { %p29_p1 = scmp.ge.s32.totalorder %s27_s18, 2  ;;  %p188_p2 = scmp.lt.s32.totalorder %s734_s17, 3 }
   0x5   : > { %s860_s18 = smov (%p29_p1, %s27_s18), 0  ;;  %p189_p3 = pnand %p637_p0, %p188_p2 }
   0x6   : > { %p233_p4 = scmp.lt.s32.totalorder (!%p189_p3), %s726_s15, 1  ;;  %v736_v0 = vmov (!%p189_p3), 0   ;;  %vm314_vm0 = vcmask (!%p189_p3), 1041408   ;;  %v710_v9 = vld [vmem:[%s853_s1] sm:$0xff] (!%p189_p3)   ;;  %v711_v10 = vld [vmem:[%s853_s1 + $0x8] sm:$0xff] (!%p189_p3)   ;;  %vm307_vm1 = vcmask (!%p189_p3), 293888  }
   0x7   : > { %192 = sbr.rel (%p189_p3) target bundleno = 404 (0x194), region = 28  ;;  %353 = vmatprep.mubr.bf16.mxu0 (!%p189_p3), %v736_v0  ;;  %363 = vmatprep.mubr.bf16.mxu1 (!%p189_p3), %v736_v0  ;;  %vm446_vm2 = vcmask (!%p189_p3), 7168   ;;  %v737_v11 = vmov (!%p189_p3), 0.0  }
   0xe   : > { %s862_s15 = smov (!%p233_p4, %s726_s15), 1 }
   0xf   : > { %s675_s19 = smul.u32 40, %s862_s15  ;;  %s662_s27 = sshll.u32 %s862_s15, 5 }
  0x10   : > { %s793_s30 = scalar_lea.vmem %s855_s3, %s662_s27  ;;  %s798_s7 = scalar_lea.vmem %s856_s4, %s662_s27 }
  0x11   : > { %s240_s22 = scalar_lea.vmem %s852_s0, %s675_s19  ;;  %449 = vst.msk [vmem:[%s793_s30 + $0x10] sm:$0xff] %vm446_vm2, %v737_v11  ;;  %447 = vst.msk [vmem:[%s793_s30] sm:$0xff] %vm446_vm2, %v737_v11  ;;  %s250_s10 = scalar_lea.vmem %s854_s2, %s662_s27 }
  0x12   : > { %v702_v1 = vld [vmem:[%s240_s22 + $0x4] ss:$8 sps:$4 sm:$0xff]   ;;  %v704_v2 = vld [vmem:[%s240_s22] ss:$8 sps:$4 sm:$0xff]   ;;  %v705_v3 = vld [vmem:[%s240_s22 + $0x14] ss:$8 sps:$4 sm:$0xff]  }
  0x13   : > { %321 = vmatprep.subr.bf16.mxu0 %v702_v1  ;;  %669 = vmatprep.subr.bf16.mxu1 %v702_v1  ;;  %v271_v4 = vld [vmem:[%s240_s22 + $0x20] sm:$0x33]  ;;  %v707_v5 = vld [vmem:[%s240_s22 + $0x10] ss:$8 sps:$4 sm:$0xff]   ;;  %448 = vst.msk [vmem:[%s793_s30 + $0x8] sm:$0xff] %vm446_vm2, %v737_v11  ;;  %450 = vst.msk [vmem:[%s793_s30 + $0x18] sm:$0xff] %vm446_vm2, %v737_v11 }
  0x14   : > { %322 = vmatpush1.bf16.msra.mxu0 %v704_v2  ;;  %672 = vmatpush1.bf16.msra.mxu1 %v704_v2  ;;  %v652_v6 = vcombine.high %v271_v4, %v271_v4  ;;  %v651_v7 = vcombine.low %v271_v4, %v271_v4  ;;  %451 = vst.msk [vmem:[%s798_s7] sm:$0xff] %vm446_vm2, %v737_v11  ;;  %452 = vst.msk [vmem:[%s798_s7 + $0x8] sm:$0xff] %vm446_vm2, %v737_v11 }
  0x15   : > { %323 = vmatprep.subr.bf16.mxu0 %v705_v3  ;;  %670 = vmatprep.subr.bf16.mxu1 %v705_v3  ;;  %453 = vst.msk [vmem:[%s798_s7 + $0x10] sm:$0xff] %vm446_vm2, %v737_v11  ;;  %454 = vst.msk [vmem:[%s798_s7 + $0x18] sm:$0xff] %vm446_vm2, %v737_v11 }
  0x16   : > { %v316_v8 = vsel %vm314_vm0, %v651_v7, 0 }
  0x18   : > { %324 = vmatpush1.bf16.msra.mxu0 %v707_v5  ;;  %673 = vmatpush1.bf16.msra.mxu1 %v707_v5  ;;  %v457_v40 = vld [vmem:[%s793_s30 + $0x10] sm:$0xff]  ;;  %v455_v41 = vld [vmem:[%s793_s30] sm:$0xff] }
  0x19   : > { %653 = vmatprep.subr.msk.bf16.mxu0 %vm314_vm0, %v652_v6  ;;  %671 = vmatprep.subr.msk.bf16.mxu1 %vm314_vm0, %v652_v6 }
  0x1a   : > { %v458_v46 = vld [vmem:[%s793_s30 + $0x18] sm:$0xff]  ;;  %v456_v47 = vld [vmem:[%s793_s30 + $0x8] sm:$0xff] }
  0x1b   : > { %v469_v52 = vld [vmem:[%s798_s7 + $0x8] sm:$0xff]  ;;  %v468_v53 = vld [vmem:[%s798_s7] sm:$0xff] }
  0x1c   : > { %326 = vmatpush1.bf16.msra.mxu0 %v316_v8  ;;  %674 = vmatpush1.bf16.msra.mxu1 %v316_v8  ;;  %v471_v58 = vld [vmem:[%s798_s7 + $0x18] sm:$0xff]  ;;  %v470_v59 = vld [vmem:[%s798_s7 + $0x10] sm:$0xff] }
  0x1f   : > { %654 = vmatmul.mubr.msk.bf16.vlgmr.msra.gmra.mrb[0].mxu0 %vm307_vm1, %v710_v9  ;;  %655 = vmatmul.mubr.msk.bf16.vlgmr.msra.gmra.mrb[0].mxu1 %vm307_vm1, %v711_v10 }
  0xf2   : > { %v355_v12 = vpop.f32.mrb[0].mxu0  ;;  %v365_v13 = vpop.f32.mrb[0].mxu1 }
  0xf3   : > { %v357_v14 = vpop.f32.mrb[1].mxu0  ;;  %v367_v15 = vpop.f32.mrb[1].mxu1  ;;  %v418_v16 = vmul.f32 %v355_v12, %v355_v12  ;;  %v422_v17 = vmul.f32 %v365_v13, %v365_v13 }
  0xf4   : > { %v665_v18 = vpack.c.bf16 %v357_v14, %v355_v12  ;;  %v667_v19 = vpack.c.bf16 %v367_v15, %v365_v13  ;;  %v359_v20 = vpop.f32.mrb[2].mxu0  ;;  %v369_v21 = vpop.f32.mrb[2].mxu1  ;;  %v408_v22 = vadd.f32 %v367_v15, %v365_v13  ;;  %v402_v23 = vadd.f32 %v357_v14, %v355_v12 }
  0xf5   : > { %v361_v24 = vpop.f32.mrb[3].mxu0  ;;  %v371_v25 = vpop.f32.mrb[3].mxu1  ;;  %v420_v26 = vmul.f32 %v359_v20, %v359_v20  ;;  %v419_v27 = vmul.f32 %v357_v14, %v357_v14  ;;  %v424_v28 = vmul.f32 %v369_v21, %v369_v21  ;;  %v423_v29 = vmul.f32 %v367_v15, %v367_v15 }
  0xf6   : > { %398 = vst [vmem:[%s250_s10] sm:$0xff] %v665_v18  ;;  %400 = vst [vmem:[%s250_s10 + $0x10] sm:$0xff] %v667_v19  ;;  %v666_v30 = vpack.c.bf16 %v361_v24, %v359_v20  ;;  %v421_v31 = vmul.f32 %v361_v24, %v361_v24  ;;  %v668_v32 = vpack.c.bf16 %v371_v25, %v369_v21  ;;  %409 = vadd.xlane.f32.xlu1 %v408_v22 }
  0xf7   : > { %v425_v33 = vmul.f32 %v371_v25, %v371_v25  ;;  %403 = vadd.xlane.f32.xlu0 %v402_v23  ;;  %v411_v34 = vadd.f32 %v371_v25, %v369_v21  ;;  %v405_v35 = vadd.f32 %v361_v24, %v359_v20  ;;  %v426_v36 = vadd.f32 %v419_v27, %v418_v16 }
  0xf8   : > { %v432_v37 = vadd.f32 %v423_v29, %v422_v17  ;;  %399 = vst [vmem:[%s250_s10 + $0x8] sm:$0xff] %v666_v30  ;;  %401 = vst [vmem:[%s250_s10 + $0x18] sm:$0xff] %v668_v32  ;;  %v429_v38 = vadd.f32 %v421_v31, %v420_v26 }
  0xf9   : > { %v435_v39 = vadd.f32 %v425_v33, %v424_v28 }
  0xfa   : > { %412 = vadd.xlane.f32.xlu1 %v411_v34 }
  0xfb   : > { %406 = vadd.xlane.f32.xlu0 %v405_v35 }
  0xfe   : > { %430 = vadd.xlane.f32.xlu1 %v429_v38 }
  0xff   : > { %427 = vadd.xlane.f32.xlu0 %v426_v36 }
 0x102   : > { %436 = vadd.xlane.f32.xlu1 %v435_v39 }
 0x103   : > { %433 = vadd.xlane.f32.xlu0 %v432_v37 }
 0x183   : > { %v410_v42 = vpop.xlane.xlu1 %409 }
 0x184   : > { %v461_v43 = vadd.f32 %v457_v40, %v410_v42  ;;  %v404_v44 = vpop.xlane.xlu0 %403 }
 0x185   : > { %v459_v45 = vadd.f32 %v455_v41, %v404_v44 }
 0x186   : > { %466 = vst.msk [vmem:[%s793_s30 + $0x10] sm:$0xff] %vm446_vm2, %v461_v43 }
 0x187   : > { %464 = vst.msk [vmem:[%s793_s30] sm:$0xff] %vm446_vm2, %v459_v45  ;;  %v413_v48 = vpop.xlane.xlu1 %412 }
 0x188   : > { %v462_v49 = vadd.f32 %v458_v46, %v413_v48  ;;  %v407_v50 = vpop.xlane.xlu0 %406 }
 0x189   : > { %v460_v51 = vadd.f32 %v456_v47, %v407_v50 }
 0x18a   : > { %467 = vst.msk [vmem:[%s793_s30 + $0x18] sm:$0xff] %vm446_vm2, %v462_v49 }
 0x18b   : > { %465 = vst.msk [vmem:[%s793_s30 + $0x8] sm:$0xff] %vm446_vm2, %v460_v51  ;;  %v431_v54 = vpop.xlane.xlu1 %430 }
 0x18c   : > { %v473_v55 = vadd.f32 %v469_v52, %v431_v54  ;;  %v428_v56 = vpop.xlane.xlu0 %427 }
 0x18d   : > { %v472_v57 = vadd.f32 %v468_v53, %v428_v56 }
 0x18e   : > { %477 = vst.msk [vmem:[%s798_s7 + $0x8] sm:$0xff] %vm446_vm2, %v473_v55 }
 0x18f   : > { %476 = vst.msk [vmem:[%s798_s7] sm:$0xff] %vm446_vm2, %v472_v57  ;;  %v437_v60 = vpop.xlane.xlu1 %436 }
 0x190   : > { %v475_v61 = vadd.f32 %v471_v58, %v437_v60  ;;  %v434_v62 = vpop.xlane.xlu0 %433 }
 0x191   : > { %v474_v63 = vadd.f32 %v470_v59, %v434_v62 }
 0x192   : > { %479 = vst.msk [vmem:[%s798_s7 + $0x18] sm:$0xff] %vm446_vm2, %v475_v61 }
 0x193   : > { %478 = vst.msk [vmem:[%s798_s7 + $0x10] sm:$0xff] %vm446_vm2, %v474_v63 }
 0x194 PF: > { %s15_s17 = sadd.s32 1, %s734_s17   ;;  %s857_s15 = smov %s730_s16 }
 0x195   : > { %p12_p5 = scmp.ge.s32.totalorder %s15_s17, 4   ;;  %s858_s16 = smov %s860_s18 }
 0x197   :  { %14 = sbr.rel (!%p12_p5) target bundleno = 2 (0x2), region = 86 }

</bundles_post_ra>
